<compile_context>
chip_gen: v7x
topology: tpu7x:2x2x1
jax: 0.10.0
libtpu: 0.0.40
codegen_flags: <defaults>
</compile_context>

<pallas_src>
import functools

import jax
import jax.numpy as jnp
from jax import lax
from jax.experimental import pallas as pl
from jax.experimental.pallas import tpu as pltpu


def _round_up(n, m):
    return ((n + m - 1) // m) * m


def _vmem_limit(footprint_bytes):
    # generous margin, capped so the limit is valid on every generation (v7x: 64 MiB VMEM)
    return int(min(64 * 1024 * 1024, max(footprint_bytes + (4 << 20), 16 << 20)))


def _apply_act(z, activation, alpha):
    if activation == "relu":
        return jnp.maximum(z, 0.0)
    if activation == "gelu":
        return jax.nn.gelu(z)
    if activation in ("sine", "adaptive_sine"):
        return jnp.sin(alpha * z)
    if activation in ("identity", None):
        return z
    raise NotImplementedError(f"Activation {activation} not implemented")


# ----------------------------------------------------------------------------
# Kernel 1: per-mode channel mixing  out[b,o,m] = sum_i x[i,b,m] * w[i,o,m]
# Grid is over mode tiles (parallel); the whole batch sits inside the block so
# each weight tile is streamed once per pass and reused for all batches.
# ----------------------------------------------------------------------------
def _spectral_mix_kernel(x_ref, w_ref, o_ref):
    # x_ref: (Ci, B, mt)   retained Fourier modes (re/im flattened along mt), all batches
    # w_ref: (Ci, Co, mt)  spectral-weight tile (weights1 ++ weights2 along mode axis)
    # o_ref: (B, Co, mt)
    ci = x_ref.shape[0]
    zeros = jnp.zeros(o_ref.shape, jnp.float32)

    def body(p, accs):
        a0, a1 = accs
        i = 2 * p
        a0 = a0 + (x_ref[i].astype(jnp.float32)[:, None, :]
                   * w_ref[i].astype(jnp.float32)[None, :, :])
        a1 = a1 + (x_ref[i + 1].astype(jnp.float32)[:, None, :]
                   * w_ref[i + 1].astype(jnp.float32)[None, :, :])
        return a0, a1

    n_pairs = ci // 2
    if n_pairs > 0:
        a0, a1 = lax.fori_loop(0, n_pairs, body, (zeros, zeros),
                               unroll=min(4, n_pairs))
    else:
        a0, a1 = zeros, zeros
    acc = a0 + a1
    if ci % 2:                                  # static remainder channel
        i = ci - 1
        acc = acc + (x_ref[i].astype(jnp.float32)[:, None, :]
                     * w_ref[i].astype(jnp.float32)[None, :, :])
    o_ref[...] = acc.astype(o_ref.dtype)


# ----------------------------------------------------------------------------
# Kernel 2: fused 1x1 conv (MXU) + bias + residual + activation, two outputs
# ----------------------------------------------------------------------------
def _pointwise_conv_act_kernel(alpha_ref, w_ref, b_ref, y_ref, u_ref,
                               wact_ref, uact_ref, *, activation):
    # alpha_ref: (1,) SMEM scalar (sine frequency; ignored for relu/gelu/identity)
    # w_ref: (Co, Ci)  1x1-conv weight      b_ref: (Co, 1)  bias
    # y_ref: (1, Ci, T) spectral-conv output tile; u_ref: (1, Ci, T) residual tile
    alpha = alpha_ref[0]
    y = y_ref[0].astype(jnp.float32)                              # (Ci, T)
    z = jnp.dot(w_ref[...].astype(jnp.float32), y,
                preferred_element_type=jnp.float32)               # (Co, T) on the MXU
    z = z + b_ref[...].astype(jnp.float32)                        # lane-broadcast bias
    u = u_ref[0].astype(jnp.float32)
    wact_ref[0] = _apply_act(z, activation, alpha).astype(wact_ref.dtype)
    uact_ref[0] = _apply_act(u + z, activation, alpha).astype(uact_ref.dtype)


def _pick_hw_tile(HW, max_tile):
    """Return (tile, padded_HW); prefer a divisor of HW so no pad/slice HBM passes exist."""
    if HW <= max_tile:
        return HW, HW                                  # full-extent block (always legal)
    if HW % 128 == 0:
        best = 128
        t = 256
        while t <= max_tile:
            if HW % t == 0:
                best = t
            t += 128
        return best, HW
    # TODO(synk): ragged spatial sizes fall back to one padded pass (extra pad/slice traffic)
    tile = min(max_tile, _round_up(HW, 128))
    return tile, _round_up(HW, tile)


# ----------------------------------------------------------------------------
# Layer wrapper
# ----------------------------------------------------------------------------
def nbso_fourier_layer(v_c, w_n, u_n, weights1, weights2, conv_w, conv_b,
                       wavenumber1, wavenumber2, *, activation="relu",
                       sine_alpha=1.0, hw_tile_max=4096, mode_tile_max=2048,
                       spectral_weight_dtype=None):
    """v_c, w_n, u_n: (B, C, H, W).  weights1/2: (C, C, k1, k2, 2).
    conv_w: (C, C) (out, in) 1x1-conv weight, conv_b: (C,).
    Returns (act(W(fourier_conv(w_n, v_c))), act(u_n + W(fourier_conv(w_n, v_c))))."""
    B, C, H, W = w_n.shape
    k1, k2 = wavenumber1, wavenumber2
    Wr = W // 2 + 1
    assert k1 <= H and k2 <= Wr, "wavenumbers must fit the rfft2 grid"

    # ---------------- spectral transform (plain-JAX glue, no Pallas FFT) ----------------
    xf = jnp.fft.rfft2(w_n.astype(jnp.float32) * v_c.astype(jnp.float32))   # (B, C, H, Wr) c64
    xri = jnp.stack([xf.real, xf.imag], axis=-1)                            # (B, C, H, Wr, 2)
    top = xri[:, :, :k1, :k2, :]
    bot = xri[:, :, H - k1:, :k2, :]

    M = 2 * k1 * k2 * 2                                                     # both corners, re+im
    x_modes = jnp.concatenate([top.reshape(B, C, -1),
                               bot.reshape(B, C, -1)], axis=-1)             # (B, Ci, M)
    x_modes = jnp.transpose(x_modes, (1, 0, 2))                             # (Ci, B, M)
    w_modes = jnp.concatenate([weights1.reshape(C, C, -1),
                               weights2.reshape(C, C, -1)], axis=-1)        # (Ci, Co, M)
    if spectral_weight_dtype is not None:                                   # e.g. bf16: halves DMA
        w_modes = w_modes.astype(spectral_weight_dtype)
    w_bytes = jnp.dtype(w_modes.dtype).itemsize

    # mode-tile size: lane-dense, bounded by a VMEM budget (double-buffered blocks + acc)
    per_lane1 = 2 * (C * B * 4 + C * C * w_bytes + B * C * 4) + 2 * B * C * 4
    budget1 = 12 << 20
    m_tile = max(128, min(_round_up(M, 128), mode_tile_max,
                          (budget1 // per_lane1) // 128 * 128))
    Mp = _round_up(M, m_tile)
    if Mp != M:
        x_modes = jnp.pad(x_modes, ((0, 0), (0, 0), (0, Mp - M)))
        w_modes = jnp.pad(w_modes, ((0, 0), (0, 0), (0, Mp - M)))

    k1_footprint = 2 * m_tile * (C * B * 4 + C * C * w_bytes + B * C * 4)
    out_modes = pl.pallas_call(
        _spectral_mix_kernel,
        out_shape=jax.ShapeDtypeStruct((B, C, Mp), jnp.float32),
        grid_spec=pltpu.PrefetchScalarGridSpec(
            num_scalar_prefetch=0,
            grid=(Mp // m_tile,),
            in_specs=[
                pl.BlockSpec((C, B, m_tile), lambda t: (0, 0, t)),
                pl.BlockSpec((C, C, m_tile), lambda t: (0, 0, t)),
            ],
            out_specs=pl.BlockSpec((B, C, m_tile), lambda t: (0, 0, t)),
        ),
        compiler_params=pltpu.CompilerParams(
            dimension_semantics=("parallel",),
            vmem_limit_bytes=_vmem_limit(k1_footprint)),
    )(x_modes.astype(jnp.float32), w_modes)

    out_modes = out_modes[:, :, :M]
    half = M // 2
    top_o = out_modes[:, :, :half].reshape(B, C, k1, k2, 2)
    bot_o = out_modes[:, :, half:].reshape(B, C, k1, k2, 2)
    out_ri = jnp.zeros((B, C, H, Wr, 2), jnp.float32)
    out_ri = out_ri.at[:, :, :k1, :k2, :].set(top_o)
    out_ri = out_ri.at[:, :, H - k1:, :k2, :].set(bot_o)
    y = jnp.fft.irfft2(out_ri[..., 0] + 1j * out_ri[..., 1], s=(H, W))      # (B, C, H, W) f32

    # -------------- fused 1x1 conv + bias + residual + activation (Pallas) --------------
    HW = H * W
    wout_dtype, uout_dtype = w_n.dtype, u_n.dtype
    per_lane2 = 2 * C * (4 + jnp.dtype(u_n.dtype).itemsize
                         + jnp.dtype(wout_dtype).itemsize
                         + jnp.dtype(uout_dtype).itemsize)
    budget2 = 24 << 20
    max_tile = max(128, min(hw_tile_max, (budget2 // per_lane2) // 128 * 128))
    hw_tile, HWp = _pick_hw_tile(HW, max_tile)

    y2 = y.reshape(B, C, HW)
    u2 = u_n.reshape(B, C, HW)                      # native dtype; upcast in-kernel
    if HWp != HW:
        y2 = jnp.pad(y2, ((0, 0), (0, 0), (0, HWp - HW)))
        u2 = jnp.pad(u2, ((0, 0), (0, 0), (0, HWp - HW)))
    b2 = conv_b.reshape(C, 1).astype(jnp.float32)
    alpha = jnp.asarray([sine_alpha], jnp.float32)

    k2_footprint = hw_tile * per_lane2 + 2 * (C * C * 4 + C * 4)
    kernel = functools.partial(_pointwise_conv_act_kernel, activation=activation)
    w_act, u_act = pl.pallas_call(
        kernel,
        out_shape=(jax.ShapeDtypeStruct((B, C, HWp), wout_dtype),
                   jax.ShapeDtypeStruct((B, C, HWp), uout_dtype)),
        grid_spec=pltpu.PrefetchScalarGridSpec(
            num_scalar_prefetch=0,
            grid=(B, HWp // hw_tile),
            in_specs=[
                pl.BlockSpec(memory_space=pltpu.MemorySpace.SMEM),
                pl.BlockSpec((C, C), lambda b, t: (0, 0)),
                pl.BlockSpec((C, 1), lambda b, t: (0, 0)),
                pl.BlockSpec((1, C, hw_tile), lambda b, t: (b, 0, t)),
                pl.BlockSpec((1, C, hw_tile), lambda b, t: (b, 0, t)),
            ],
            out_specs=[
                pl.BlockSpec((1, C, hw_tile), lambda b, t: (b, 0, t)),
                pl.BlockSpec((1, C, hw_tile), lambda b, t: (b, 0, t)),
            ],
        ),
        compiler_params=pltpu.CompilerParams(
            dimension_semantics=("parallel", "parallel"),
            vmem_limit_bytes=_vmem_limit(k2_footprint)),
    )(alpha, conv_w.astype(jnp.float32), b2, y2, u2)

    if HWp != HW:
        w_act = w_act[:, :, :HW]
        u_act = u_act[:, :, :HW]
    return w_act.reshape(B, C, H, W), u_act.reshape(B, C, H, W)


# ----------------------------------------------------------------------------
# Pure-JAX reference mirroring the PyTorch forward
# ----------------------------------------------------------------------------
def nbso_fourier_layer_reference(v_c, w_n, u_n, weights1, weights2, conv_w, conv_b,
                                 wavenumber1, wavenumber2, activation="relu",
                                 sine_alpha=1.0):
    B, C, H, W = w_n.shape
    k1, k2 = wavenumber1, wavenumber2
    Wr = W // 2 + 1
    xf = jnp.fft.rfft2(w_n * v_c)
    xri = jnp.stack([xf.real, xf.imag], axis=-1)
    out_ri = jnp.zeros((B, C, H, Wr, 2), jnp.float32)
    top = jnp.einsum("bixyz,ioxyz->boxyz", xri[:, :, :k1, :k2, :], weights1)
    bot = jnp.einsum("bixyz,ioxyz->boxyz", xri[:, :, H - k1:, :k2, :], weights2)
    out_ri = out_ri.at[:, :, :k1, :k2, :].set(top)
    out_ri = out_ri.at[:, :, H - k1:, :k2, :].set(bot)
    y = jnp.fft.irfft2(out_ri[..., 0] + 1j * out_ri[..., 1], s=(H, W))
    z = jnp.einsum("oi,bihw->bohw", conv_w, y) + conv_b[None, :, None, None]
    act = lambda t: _apply_act(t, activation, jnp.float32(sine_alpha))
    return act(z), act(u_n + z)


if __name__ == "__main__":
    B, C, H, W = 2, 8, 16, 16
    k1 = k2 = 4

    key = jax.random.PRNGKey(0)
    ks = jax.random.split(key, 7)

    scale = 1.0 / (C * C)
    weights1 = scale * jax.random.uniform(ks[0], (C, C, k1, k2, 2), dtype=jnp.float32)
    weights2 = scale * jax.random.uniform(ks[1], (C, C, k1, k2, 2), dtype=jnp.float32)
    conv_w = jax.random.normal(ks[2], (C, C), dtype=jnp.float32) / jnp.sqrt(jnp.float32(C))
    conv_b = 0.01 * jax.random.normal(ks[3], (C,), dtype=jnp.float32)

    v_c = jax.random.normal(ks[4], (B, C, H, W), dtype=jnp.float32)
    w_n = jax.random.normal(ks[5], (B, C, H, W), dtype=jnp.float32)
    u_n = jax.random.normal(ks[6], (B, C, H, W), dtype=jnp.float32)

    # exact-dtype path: f32 spectral weights, relu
    w_out, u_out = nbso_fourier_layer(v_c, w_n, u_n, weights1, weights2,
                                      conv_w, conv_b, k1, k2, activation="relu")
    w_out = jax.block_until_ready(w_out)
    u_out = jax.block_until_ready(u_out)

    w_ref, u_ref = nbso_fourier_layer_reference(v_c, w_n, u_n, weights1, weights2,
                                                conv_w, conv_b, k1, k2, "relu")
    assert w_out.shape == (B, C, H, W) and u_out.shape == (B, C, H, W)
    assert jnp.allclose(w_out, w_ref, rtol=1e-4, atol=1e-4), "w_out mismatch vs reference"
    assert jnp.allclose(u_out, u_ref, rtol=1e-4, atol=1e-4), "u_out mismatch vs reference"

    # sine path exercises the SMEM alpha scalar; bf16 spectral weights exercise the
    # halved-HBM-traffic weight stream (looser tolerance: weights quantized to bf16).
    w_s, u_s = nbso_fourier_layer(v_c, w_n, u_n, weights1, weights2, conv_w, conv_b,
                                  k1, k2, activation="sine", sine_alpha=1.3,
                                  spectral_weight_dtype=jnp.bfloat16)
    w_s = jax.block_until_ready(w_s)
    u_s = jax.block_until_ready(u_s)
    w_sr, u_sr = nbso_fourier_layer_reference(v_c, w_n, u_n, weights1, weights2,
                                              conv_w, conv_b, k1, k2, "sine", 1.3)
    assert jnp.allclose(w_s, w_sr, rtol=5e-2, atol=5e-2), "sine/bf16 w_out mismatch"
    assert jnp.allclose(u_s, u_sr, rtol=5e-2, atol=5e-2), "sine/bf16 u_out mismatch"

    print("KERNEL_OK")
</pallas_src>

<mosaic_0001>
module attributes {stable_mosaic.version = 11 : i64} {
  func.func @_spectral_mix_kernel(%arg0: i32, %arg1: memref<8x2x128xf32, #tpu.memory_space<vmem>>, %arg2: memref<8x8x128xf32, #tpu.memory_space<vmem>>, %arg3: memref<2x8x128xf32, #tpu.memory_space<vmem>>) attributes {dimension_semantics = [#tpu.dimension_semantics<parallel>], iteration_bounds = array<i64: 1>, scalar_prefetch = 0 : i64, scratch_operands = 0 : i64, tpu.core_type = #tpu.core_type<tc>, window_params = [{transform_indices = @transform_0, window_bounds = array<i64: 8, 2, 128>}, {transform_indices = @transform_1, window_bounds = array<i64: 8, 8, 128>}, {transform_indices = @transform_2, window_bounds = array<i64: 2, 8, 128>}]} {
    %cst = arith.constant 0.000000e+00 : f32
    %0 = vector.broadcast %cst : f32 to vector<2x8x128xf32>
    %c0_i32 = arith.constant 0 : i32
    %c2_i32 = arith.constant 2 : i32
    %1 = arith.muli %c2_i32, %c0_i32 : i32
    %2 = arith.index_cast %1 : i32 to index
    %c0 = arith.constant 0 : index
    %c0_0 = arith.constant 0 : index
    %3 = vector.load %arg1[%2, %c0, %c0_0] : memref<8x2x128xf32, #tpu.memory_space<vmem>>, vector<1x2x128xf32>
    %4 = vector.shape_cast %3 : vector<1x2x128xf32> to vector<2x128xf32>
    %5 = vector.shape_cast %4 : vector<2x128xf32> to vector<2x1x128xf32>
    %6 = arith.index_cast %1 : i32 to index
    %c0_1 = arith.constant 0 : index
    %c0_2 = arith.constant 0 : index
    %7 = vector.load %arg2[%6, %c0_1, %c0_2] : memref<8x8x128xf32, #tpu.memory_space<vmem>>, vector<1x8x128xf32>
    %8 = vector.shape_cast %7 : vector<1x8x128xf32> to vector<8x128xf32>
    %9 = vector.shape_cast %8 : vector<8x128xf32> to vector<1x8x128xf32>
    %10 = vector.broadcast %5 : vector<2x1x128xf32> to vector<2x8x128xf32>
    %11 = vector.broadcast %9 : vector<1x8x128xf32> to vector<2x8x128xf32>
    %12 = arith.mulf %10, %11 : vector<2x8x128xf32>
    %13 = arith.addf %0, %12 : vector<2x8x128xf32>
    %c1_i32 = arith.constant 1 : i32
    %14 = arith.addi %1, %c1_i32 : i32
    %15 = arith.index_cast %14 : i32 to index
    %c0_3 = arith.constant 0 : index
    %c0_4 = arith.constant 0 : index
    %16 = vector.load %arg1[%15, %c0_3, %c0_4] : memref<8x2x128xf32, #tpu.memory_space<vmem>>, vector<1x2x128xf32>
    %17 = vector.shape_cast %16 : vector<1x2x128xf32> to vector<2x128xf32>
    %18 = vector.shape_cast %17 : vector<2x128xf32> to vector<2x1x128xf32>
    %c1_i32_5 = arith.constant 1 : i32
    %19 = arith.addi %1, %c1_i32_5 : i32
    %20 = arith.index_cast %19 : i32 to index
    %c0_6 = arith.constant 0 : index
    %c0_7 = arith.constant 0 : index
    %21 = vector.load %arg2[%20, %c0_6, %c0_7] : memref<8x8x128xf32, #tpu.memory_space<vmem>>, vector<1x8x128xf32>
    %22 = vector.shape_cast %21 : vector<1x8x128xf32> to vector<8x128xf32>
    %23 = vector.shape_cast %22 : vector<8x128xf32> to vector<1x8x128xf32>
    %24 = vector.broadcast %18 : vector<2x1x128xf32> to vector<2x8x128xf32>
    %25 = vector.broadcast %23 : vector<1x8x128xf32> to vector<2x8x128xf32>
    %26 = arith.mulf %24, %25 : vector<2x8x128xf32>
    %27 = arith.addf %0, %26 : vector<2x8x128xf32>
    %c1_i32_8 = arith.constant 1 : i32
    %c2_i32_9 = arith.constant 2 : i32
    %28 = arith.muli %c2_i32_9, %c1_i32_8 : i32
    %29 = arith.index_cast %28 : i32 to index
    %c0_10 = arith.constant 0 : index
    %c0_11 = arith.constant 0 : index
    %30 = vector.load %arg1[%29, %c0_10, %c0_11] : memref<8x2x128xf32, #tpu.memory_space<vmem>>, vector<1x2x128xf32>
    %31 = vector.shape_cast %30 : vector<1x2x128xf32> to vector<2x128xf32>
    %32 = vector.shape_cast %31 : vector<2x128xf32> to vector<2x1x128xf32>
    %33 = arith.index_cast %28 : i32 to index
    %c0_12 = arith.constant 0 : index
    %c0_13 = arith.constant 0 : index
    %34 = vector.load %arg2[%33, %c0_12, %c0_13] : memref<8x8x128xf32, #tpu.memory_space<vmem>>, vector<1x8x128xf32>
    %35 = vector.shape_cast %34 : vector<1x8x128xf32> to vector<8x128xf32>
    %36 = vector.shape_cast %35 : vector<8x128xf32> to vector<1x8x128xf32>
    %37 = vector.broadcast %32 : vector<2x1x128xf32> to vector<2x8x128xf32>
    %38 = vector.broadcast %36 : vector<1x8x128xf32> to vector<2x8x128xf32>
    %39 = arith.mulf %37, %38 : vector<2x8x128xf32>
    %40 = arith.addf %13, %39 : vector<2x8x128xf32>
    %c1_i32_14 = arith.constant 1 : i32
    %41 = arith.addi %28, %c1_i32_14 : i32
    %42 = arith.index_cast %41 : i32 to index
    %c0_15 = arith.constant 0 : index
    %c0_16 = arith.constant 0 : index
    %43 = vector.load %arg1[%42, %c0_15, %c0_16] : memref<8x2x128xf32, #tpu.memory_space<vmem>>, vector<1x2x128xf32>
    %44 = vector.shape_cast %43 : vector<1x2x128xf32> to vector<2x128xf32>
    %45 = vector.shape_cast %44 : vector<2x128xf32> to vector<2x1x128xf32>
    %c1_i32_17 = arith.constant 1 : i32
    %46 = arith.addi %28, %c1_i32_17 : i32
    %47 = arith.index_cast %46 : i32 to index
    %c0_18 = arith.constant 0 : index
    %c0_19 = arith.constant 0 : index
    %48 = vector.load %arg2[%47, %c0_18, %c0_19] : memref<8x8x128xf32, #tpu.memory_space<vmem>>, vector<1x8x128xf32>
    %49 = vector.shape_cast %48 : vector<1x8x128xf32> to vector<8x128xf32>
    %50 = vector.shape_cast %49 : vector<8x128xf32> to vector<1x8x128xf32>
    %51 = vector.broadcast %45 : vector<2x1x128xf32> to vector<2x8x128xf32>
    %52 = vector.broadcast %50 : vector<1x8x128xf32> to vector<2x8x128xf32>
    %53 = arith.mulf %51, %52 : vector<2x8x128xf32>
    %54 = arith.addf %27, %53 : vector<2x8x128xf32>
    %c2_i32_20 = arith.constant 2 : i32
    %c2_i32_21 = arith.constant 2 : i32
    %55 = arith.muli %c2_i32_21, %c2_i32_20 : i32
    %56 = arith.index_cast %55 : i32 to index
    %c0_22 = arith.constant 0 : index
    %c0_23 = arith.constant 0 : index
    %57 = vector.load %arg1[%56, %c0_22, %c0_23] : memref<8x2x128xf32, #tpu.memory_space<vmem>>, vector<1x2x128xf32>
    %58 = vector.shape_cast %57 : vector<1x2x128xf32> to vector<2x128xf32>
    %59 = vector.shape_cast %58 : vector<2x128xf32> to vector<2x1x128xf32>
    %60 = arith.index_cast %55 : i32 to index
    %c0_24 = arith.constant 0 : index
    %c0_25 = arith.constant 0 : index
    %61 = vector.load %arg2[%60, %c0_24, %c0_25] : memref<8x8x128xf32, #tpu.memory_space<vmem>>, vector<1x8x128xf32>
    %62 = vector.shape_cast %61 : vector<1x8x128xf32> to vector<8x128xf32>
    %63 = vector.shape_cast %62 : vector<8x128xf32> to vector<1x8x128xf32>
    %64 = vector.broadcast %59 : vector<2x1x128xf32> to vector<2x8x128xf32>
    %65 = vector.broadcast %63 : vector<1x8x128xf32> to vector<2x8x128xf32>
    %66 = arith.mulf %64, %65 : vector<2x8x128xf32>
    %67 = arith.addf %40, %66 : vector<2x8x128xf32>
    %c1_i32_26 = arith.constant 1 : i32
    %68 = arith.addi %55, %c1_i32_26 : i32
    %69 = arith.index_cast %68 : i32 to index
    %c0_27 = arith.constant 0 : index
    %c0_28 = arith.constant 0 : index
    %70 = vector.load %arg1[%69, %c0_27, %c0_28] : memref<8x2x128xf32, #tpu.memory_space<vmem>>, vector<1x2x128xf32>
    %71 = vector.shape_cast %70 : vector<1x2x128xf32> to vector<2x128xf32>
    %72 = vector.shape_cast %71 : vector<2x128xf32> to vector<2x1x128xf32>
    %c1_i32_29 = arith.constant 1 : i32
    %73 = arith.addi %55, %c1_i32_29 : i32
    %74 = arith.index_cast %73 : i32 to index
    %c0_30 = arith.constant 0 : index
    %c0_31 = arith.constant 0 : index
    %75 = vector.load %arg2[%74, %c0_30, %c0_31] : memref<8x8x128xf32, #tpu.memory_space<vmem>>, vector<1x8x128xf32>
    %76 = vector.shape_cast %75 : vector<1x8x128xf32> to vector<8x128xf32>
    %77 = vector.shape_cast %76 : vector<8x128xf32> to vector<1x8x128xf32>
    %78 = vector.broadcast %72 : vector<2x1x128xf32> to vector<2x8x128xf32>
    %79 = vector.broadcast %77 : vector<1x8x128xf32> to vector<2x8x128xf32>
    %80 = arith.mulf %78, %79 : vector<2x8x128xf32>
    %81 = arith.addf %54, %80 : vector<2x8x128xf32>
    %c3_i32 = arith.constant 3 : i32
    %c2_i32_32 = arith.constant 2 : i32
    %82 = arith.muli %c2_i32_32, %c3_i32 : i32
    %83 = arith.index_cast %82 : i32 to index
    %c0_33 = arith.constant 0 : index
    %c0_34 = arith.constant 0 : index
    %84 = vector.load %arg1[%83, %c0_33, %c0_34] : memref<8x2x128xf32, #tpu.memory_space<vmem>>, vector<1x2x128xf32>
    %85 = vector.shape_cast %84 : vector<1x2x128xf32> to vector<2x128xf32>
    %86 = vector.shape_cast %85 : vector<2x128xf32> to vector<2x1x128xf32>
    %87 = arith.index_cast %82 : i32 to index
    %c0_35 = arith.constant 0 : index
    %c0_36 = arith.constant 0 : index
    %88 = vector.load %arg2[%87, %c0_35, %c0_36] : memref<8x8x128xf32, #tpu.memory_space<vmem>>, vector<1x8x128xf32>
    %89 = vector.shape_cast %88 : vector<1x8x128xf32> to vector<8x128xf32>
    %90 = vector.shape_cast %89 : vector<8x128xf32> to vector<1x8x128xf32>
    %91 = vector.broadcast %86 : vector<2x1x128xf32> to vector<2x8x128xf32>
    %92 = vector.broadcast %90 : vector<1x8x128xf32> to vector<2x8x128xf32>
    %93 = arith.mulf %91, %92 : vector<2x8x128xf32>
    %94 = arith.addf %67, %93 : vector<2x8x128xf32>
    %c1_i32_37 = arith.constant 1 : i32
    %95 = arith.addi %82, %c1_i32_37 : i32
    %96 = arith.index_cast %95 : i32 to index
    %c0_38 = arith.constant 0 : index
    %c0_39 = arith.constant 0 : index
    %97 = vector.load %arg1[%96, %c0_38, %c0_39] : memref<8x2x128xf32, #tpu.memory_space<vmem>>, vector<1x2x128xf32>
    %98 = vector.shape_cast %97 : vector<1x2x128xf32> to vector<2x128xf32>
    %99 = vector.shape_cast %98 : vector<2x128xf32> to vector<2x1x128xf32>
    %c1_i32_40 = arith.constant 1 : i32
    %100 = arith.addi %82, %c1_i32_40 : i32
    %101 = arith.index_cast %100 : i32 to index
    %c0_41 = arith.constant 0 : index
    %c0_42 = arith.constant 0 : index
    %102 = vector.load %arg2[%101, %c0_41, %c0_42] : memref<8x8x128xf32, #tpu.memory_space<vmem>>, vector<1x8x128xf32>
    %103 = vector.shape_cast %102 : vector<1x8x128xf32> to vector<8x128xf32>
    %104 = vector.shape_cast %103 : vector<8x128xf32> to vector<1x8x128xf32>
    %105 = vector.broadcast %99 : vector<2x1x128xf32> to vector<2x8x128xf32>
    %106 = vector.broadcast %104 : vector<1x8x128xf32> to vector<2x8x128xf32>
    %107 = arith.mulf %105, %106 : vector<2x8x128xf32>
    %108 = arith.addf %81, %107 : vector<2x8x128xf32>
    %c4_i32 = arith.constant 4 : i32
    %109 = arith.addf %94, %108 : vector<2x8x128xf32>
    %c0_43 = arith.constant 0 : index
    %c0_44 = arith.constant 0 : index
    %c0_45 = arith.constant 0 : index
    %110 = vector.load %arg3[%c0_43, %c0_44, %c0_45] : memref<2x8x128xf32, #tpu.memory_space<vmem>>, vector<2x8x128xf32>
    tpu.vector_store %arg3[%c0_43, %c0_44, %c0_45], %109 {strides = array<i32>} : memref<2x8x128xf32, #tpu.memory_space<vmem>>, vector<2x8x128xf32>,
    return
  }
  func.func @transform_0(%arg0: i32) -> (i32, i32, i32) {
    %c0_i32 = arith.constant 0 : i32
    %c0_i32_0 = arith.constant 0 : i32
    %c0_i32_1 = arith.constant 0 : i32
    return %c0_i32, %c0_i32_0, %arg0 : i32, i32, i32
  }
  func.func @transform_1(%arg0: i32) -> (i32, i32, i32) {
    %c0_i32 = arith.constant 0 : i32
    %c0_i32_0 = arith.constant 0 : i32
    %c0_i32_1 = arith.constant 0 : i32
    return %c0_i32, %c0_i32_0, %arg0 : i32, i32, i32
  }
  func.func @transform_2(%arg0: i32) -> (i32, i32, i32) {
    %c0_i32 = arith.constant 0 : i32
    %c0_i32_0 = arith.constant 0 : i32
    %c0_i32_1 = arith.constant 0 : i32
    return %c0_i32, %c0_i32_0, %arg0 : i32, i32, i32
  }
}

</mosaic_0001>

<bundles_post_ra>
// kernel: tpu_custom_call.1
= control target key start
LH: loop header
LB: loop body
LE: loop exit
PB: predicated region body
PF: predicated region fallthrough
CT: control target
= control target key end

     0   :  { %7 = vsyncpa [#allocation3], 0  ;;  %s577_s0 = inlined_call_operand.hbm [shape: f32[8,2,128], index: 0, kind: input, shape index: {}]   ;;  %s578_s1 = inlined_call_operand.hbm [shape: f32[8,8,128], index: 1, kind: input, shape index: {}]   ;;  %s579_s2 = inlined_call_operand.hbm [shape: f32[2,8,128], index: 2, kind: output, shape index: {}]  }
   0x1   :  { %8 = vsyncpa [#allocation6], 0 }
   0x2   :  { %9 = vsyncpa [#allocation4], 0  ;;  %s476_s9 = smov [#allocation2]   ;;  %s404_s13 = scalar_lea.hbm %s577_s0, 256 }
   0x3   :  { %s15_s10 = sshll.u32 %s476_s9, 4  ;;  %p405_p0 = scmp.ne.s32.totalorder %s577_s0, %s404_s13  ;;  %s16_s10 = int_to_ptr.vmem [resolvable:$true] %s15_s10 }
   0x4   :  { %p408_p1 = scmp.lt.u32.totalorder %s404_s13, %s577_s0 }
   0x6   :  { %p410_p2 = pnand %p408_p1, %p405_p0 }
   0x8   :  { %413 = shalt.err (!%p410_p2)
}
   0x9   :  { %s414_s18 = scalar_lea.vmem %s16_s10, 256  ;;  %p419_p4 = scmp.lt.s32.totalorder %s16_s10, %s16_s10 }
   0xa   :  { %p415_p3 = scmp.ne.s32.totalorder %s16_s10, %s414_s18  ;;  %p420_p5 = scmp.lt.s32.totalorder %s414_s18, %s414_s18 }
   0xc   :  { %p421_p6 = por %p420_p5, %p419_p4 }
   0xe   :  { %p422_p7 = pnand %p421_p6, %p415_p3 }
  0x10   :  { %425 = shalt.err (!%p422_p7)
}
  0x11   :  { %s477_s19 = smov 32   ;;  %s478_s20 = smov 2  }
  0x12   :  { %21 = dma.hbm_to_vmem [thread:$0]  %s577_s0, 256, %s16_s10, [#allocation3], %s477_s19, %s477_s19, %s478_s20  }
  0x13   :  { %s479_s23 = smov [#allocation5]   ;;  %s426_s27 = scalar_lea.hbm %s578_s1, 1024 }
  0x14   :  { %s27_s24 = sshll.u32 %s479_s23, 4  ;;  %p427_p8 = scmp.ne.s32.totalorder %s578_s1, %s426_s27  ;;  %s28_s24 = int_to_ptr.vmem [resolvable:$true] %s27_s24 }
  0x15   :  { %p430_p9 = scmp.lt.u32.totalorder %s426_s27, %s578_s1 }
  0x17   :  { %p432_p10 = pnand %p430_p9, %p427_p8 }
  0x19   :  { %435 = shalt.err (!%p432_p10)
}
  0x1a   :  { %s436_s4 = scalar_lea.vmem %s28_s24, 1024  ;;  %p441_p12 = scmp.lt.s32.totalorder %s28_s24, %s28_s24 }
  0x1b   :  { %p437_p11 = scmp.ne.s32.totalorder %s28_s24, %s436_s4  ;;  %p442_p13 = scmp.lt.s32.totalorder %s436_s4, %s436_s4 }
  0x1d   :  { %p443_p0 = por %p442_p13, %p441_p12 }
  0x1f   :  { %p444_p1 = pnand %p443_p0, %p437_p11 }
  0x21   :  { %447 = shalt.err (!%p444_p1)
}
  0x22   :  { %s480_s0 = smov 128   ;;  %s481_s5 = smov 8  }
  0x23   :  { %33 = dma.hbm_to_vmem [thread:$0]  %s578_s1, 1024, %s28_s24, [#allocation6], %s480_s0, %s480_s0, %s481_s5  }
  0x24   :  { %470 = dma.done.wait [#allocation3], 256  }
  0x25   :  { %471 = vsyncadd [#allocation3], 4294967040 }
  0x26   :  { %472 = dma.done.wait [#allocation6], 1024  }
  0x27   :  { %473 = vsyncadd [#allocation6], 4294966272  ;;  %v53_v0 = vlaneseq  ;;  %v482_v1 = vmov 1966171168   ;;  %v64_v11 = vld [vmem:[#allocation5] sm:$0xff]  ;;  %v105_v16 = vld [vmem:[#allocation5 + $0x8] sm:$0xff] }
  0x28   :  { %v51_v2 = vunpack.c.l.s4 %v482_v1  ;;  %v388_v7 = vld.sshfl [vmem:[#allocation2] sm:$0x11 pattern:$0x75316420]  ;;  %v187_v29 = vld [vmem:[#allocation5 + $0x18] sm:$0xff]  ;;  %v228_v35 = vld [vmem:[#allocation5 + $0x20] sm:$0xff] }
  0x29   :  { %v54_v3 = vshrl.u32 %v53_v0, 7  ;;  %v389_v9 = vld.sshfl [vmem:[#allocation2 + $0x2] sm:$0x11 pattern:$0x75316420]  ;;  %v49_v10 = vcombine.high %v388_v7, %v388_v7  ;;  %v269_v41 = vld [vmem:[#allocation5 + $0x28] sm:$0xff] }
  0x2a   :  { %v52_v4 = vunpack.c.0.s8 %v51_v2  ;;  %v390_v13 = vld.sshfl [vmem:[#allocation2 + $0x4] sm:$0x11 pattern:$0x75316420]  ;;  %v89_v14 = vcombine.high %v389_v9, %v389_v9  ;;  %v351_v53 = vld [vmem:[#allocation5 + $0x38] sm:$0xff]  ;;  %s483_s1 = smov [#allocation7]  }
  0x2b   :  { %v528_v6 = vsub.s32 0, %v54_v3  ;;  %v391_v18 = vld.sshfl [vmem:[#allocation2 + $0x6] sm:$0x11 pattern:$0x75316420]  ;;  %v130_v20 = vcombine.high %v390_v13, %v390_v13  ;;  %s375_s8 = sshll.u32 %s483_s1, 4  ;;  %s376_s8 = int_to_ptr.vmem [resolvable:$true] %s375_s8 }
  0x2c   :  { %v526_v5 = vsub.s32 %v52_v4, %v54_v3  ;;  %v146_v22 = vld [vmem:[#allocation5 + $0x10] sm:$0xff]  ;;  %v392_v24 = vld.sshfl [vmem:[#allocation2 + $0x8] sm:$0x11 pattern:$0x75316420]  ;;  %v171_v26 = vcombine.high %v391_v18, %v391_v18  ;;  %s448_s9 = scalar_lea.vmem %s376_s8, 256  ;;  %p453_p3 = scmp.lt.s32.totalorder %s376_s8, %s376_s8 }
  0x2d   :  { %v393_v31 = vld.sshfl [vmem:[#allocation2 + $0xa] sm:$0x11 pattern:$0x75316420]  ;;  %v310_v47 = vld [vmem:[#allocation5 + $0x30] sm:$0xff]  ;;  %v212_v62 = vcombine.high %v392_v24, %v392_v24  ;;  %p449_p2 = scmp.ne.s32.totalorder %s376_s8, %s448_s9  ;;  %p454_p4 = scmp.lt.s32.totalorder %s448_s9, %s448_s9 }
  0x2e   :  { %v56_v8 = vrot.slane %v388_v7, %v526_v5  ;;  %v96_v12 = vrot.slane %v389_v9, %v526_v5  ;;  %v137_v17 = vrot.slane %v390_v13, %v526_v5  ;;  %v63_v19 = vrot.slane %v49_v10, %v526_v5  ;;  %v394_v37 = vld.sshfl [vmem:[#allocation2 + $0xc] sm:$0x11 pattern:$0x75316420] }
  0x2f   :  { %v178_v23 = vrot.slane %v391_v18, %v526_v5  ;;  %v103_v25 = vrot.slane %v89_v14, %v526_v5  ;;  %v219_v30 = vrot.slane %v392_v24, %v526_v5  ;;  %v260_v36 = vrot.slane %v393_v31, %v526_v5  ;;  %v395_v43 = vld.sshfl [vmem:[#allocation2 + $0xe] sm:$0x11 pattern:$0x75316420]  ;;  %p455_p5 = por %p454_p4, %p453_p3 }
  0x30   :  { %v68_v15 = vrot.slane %v56_v8, %v528_v6  ;;  %v109_v21 = vrot.slane %v96_v12, %v528_v6  ;;  %v150_v28 = vrot.slane %v137_v17, %v528_v6  ;;  %v72_v32 = vrot.slane %v63_v19, %v528_v6 }
  0x31   :  { %v191_v34 = vrot.slane %v178_v23, %v528_v6  ;;  %v113_v38 = vrot.slane %v103_v25, %v528_v6  ;;  %v232_v40 = vrot.slane %v219_v30, %v528_v6  ;;  %v301_v42 = vrot.slane %v394_v37, %v526_v5  ;;  %p456_p6 = pnand %p455_p5, %p449_p2 }
  0x32   :  { %v75_v27 = vmul.f32 %v68_v15, %v64_v11  ;;  %v116_v33 = vmul.f32 %v109_v21, %v105_v16  ;;  %v157_v39 = vmul.f32 %v150_v28, %v146_v22  ;;  %v76_v44 = vmul.f32 %v72_v32, %v64_v11 }
  0x33   :  { %v198_v45 = vmul.f32 %v191_v34, %v187_v29  ;;  %v273_v46 = vrot.slane %v260_v36, %v528_v6  ;;  %v342_v48 = vrot.slane %v395_v43, %v526_v5  ;;  %v117_v49 = vmul.f32 %v113_v38, %v105_v16 }
  0x34   :  { %v159_v50 = vadd.f32 %v157_v39, %v75_v27  ;;  %v239_v51 = vmul.f32 %v232_v40, %v228_v35  ;;  %v314_v52 = vrot.slane %v301_v42, %v528_v6  ;;  %v144_v54 = vrot.slane %v130_v20, %v526_v5 }
  0x35   :  { %v200_v55 = vadd.f32 %v198_v45, %v116_v33  ;;  %v280_v56 = vmul.f32 %v273_v46, %v269_v41  ;;  %v355_v57 = vrot.slane %v342_v48, %v528_v6  ;;  %v185_v58 = vrot.slane %v171_v26, %v526_v5 }
  0x36   :  { %v241_v59 = vadd.f32 %v239_v51, %v159_v50  ;;  %v321_v60 = vmul.f32 %v314_v52, %v310_v47  ;;  %v154_v61 = vrot.slane %v144_v54, %v528_v6  ;;  %v253_v2 = vcombine.high %v393_v31, %v393_v31 }
  0x37   :  { %v282_v63 = vadd.f32 %v280_v56, %v200_v55  ;;  %v362_v0 = vmul.f32 %v355_v57, %v351_v53  ;;  %v195_v1 = vrot.slane %v185_v58, %v528_v6  ;;  %v226_v7 = vrot.slane %v212_v62, %v526_v5 }
  0x38   :  { %v323_v3 = vadd.f32 %v321_v60, %v241_v59  ;;  %v158_v4 = vmul.f32 %v154_v61, %v146_v22  ;;  %v294_v8 = vcombine.high %v394_v37, %v394_v37  ;;  %v267_v11 = vrot.slane %v253_v2, %v526_v5 }
  0x39   :  { %v364_v9 = vadd.f32 %v362_v0, %v282_v63  ;;  %v199_v10 = vmul.f32 %v195_v1, %v187_v29  ;;  %v335_v12 = vcombine.high %v395_v43, %v395_v43  ;;  %v236_v14 = vrot.slane %v226_v7, %v528_v6 }
  0x3a   :  { %v160_v13 = vadd.f32 %v158_v4, %v76_v44  ;;  %v308_v15 = vrot.slane %v294_v8, %v526_v5  ;;  %v277_v18 = vrot.slane %v267_v11, %v528_v6 }
  0x3b   :  { %v366_v16 = vadd.f32 %v364_v9, %v323_v3  ;;  %v201_v17 = vadd.f32 %v199_v10, %v117_v49  ;;  %v349_v19 = vrot.slane %v335_v12, %v526_v5  ;;  %v240_v20 = vmul.f32 %v236_v14, %v228_v35 }
  0x3c   :  { %v318_v21 = vrot.slane %v308_v15, %v528_v6  ;;  %v281_v22 = vmul.f32 %v277_v18, %v269_v41 }
  0x3d   :  { %368 = vst [vmem:[#allocation7] sm:$0xff] %v366_v16  ;;  %v359_v23 = vrot.slane %v349_v19, %v528_v6  ;;  %v242_v24 = vadd.f32 %v240_v20, %v160_v13 }
  0x3e   :  { %v322_v25 = vmul.f32 %v318_v21, %v310_v47  ;;  %v283_v26 = vadd.f32 %v281_v22, %v201_v17 }
  0x3f   :  { %v363_v27 = vmul.f32 %v359_v23, %v351_v53 }
  0x40   :  { %v324_v28 = vadd.f32 %v322_v25, %v242_v24 }
  0x41   :  { %v365_v29 = vadd.f32 %v363_v27, %v283_v26 }
  0x43   :  { %v367_v30 = vadd.f32 %v365_v29, %v324_v28 }
  0x45   :  { %369 = vst [vmem:[#allocation7 + $0x8] sm:$0xff] %v367_v30 }
  0x46   :  { %459 = shalt.err (!%p456_p6)
}
  0x47   :  { %s460_s12 = scalar_lea.hbm %s579_s2, 256 }
  0x48   :  { %p461_p7 = scmp.ne.s32.totalorder %s579_s2, %s460_s12  ;;  %p464_p8 = scmp.lt.u32.totalorder %s460_s12, %s579_s2 }
  0x4a   :  { %p466_p9 = pnand %p464_p8, %p461_p7 }
  0x4c   :  { %469 = shalt.err (!%p466_p9)
}
  0x4d   :  { %381 = dma.vmem_to_hbm [thread:$0]  %s376_s8, 256, %s579_s2, [#allocation4], %s480_s0, %s480_s0, %s481_s5  }
  0x4e   :  { %474 = dma.done.wait [#allocation4], 256  }
  0x4f   :  { %475 = vsyncadd [#allocation4], 4294967040 }
  0x50   :  { %385 = vsyncpa [#allocation3], 1 }
  0x51   :  { %386 = vsyncpa [#allocation6], 1 }
  0x52   :  { %387 = vsyncpa [#allocation4], 1 }

</bundles_post_ra>
